<compile_context>
chip_gen: v7x
topology: tpu7x:2x2x1
jax: 0.10.0
libtpu: 0.0.40
codegen_flags: <defaults>
</compile_context>

<pallas_src>
import jax
import jax.numpy as jnp
from jax.experimental import pallas as pl
from jax.experimental.pallas import tpu as pltpu

_MIB = 1 << 20
_LANE = 128
_SUBLANE = 8


def _round_up(x, m):
    return ((x + m - 1) // m) * m


def _make_kernel(weights_resident):
    def kernel(x_ref, wut_ref, bias_ref, ot_ref, y_ref, yx_ref):
        # x_ref   : (TILE_N, Dp)              input tile (resident across B steps)
        # wut_ref : (B or 1, 2*Dp, Dp) bf16   0.5 * [W_b^T ; U_b^T]
        # bias_ref: (B, 1, Dp) f32            0.5 * (bW_b + bU_b), fully resident
        # ot_ref  : (B or 1, Dp, Dp) bf16     O_b^T
        # y_ref   : (TILE_N, Dp)              output tile (written on last B step)
        # yx_ref  : (TILE_N, 2*Dp) f32        scratch: [:, :Dp] = y acc, [:, Dp:] = x
        bi = pl.program_id(1)
        D = x_ref.shape[1]
        widx = bi if weights_resident else 0

        @pl.when(bi == 0)
        def _():
            x_f32 = x_ref[...].astype(jnp.float32)
            yx_ref[:, :D] = x_f32            # y starts as x
            yx_ref[:, D:] = x_f32            # x half, loop-invariant across B

        yx = yx_ref[...]                     # (TILE_N, 2*Dp) f32
        yx_bf = yx.astype(jnp.bfloat16)      # bf16 operand for the MXU

        # z = 0.5*(y @ W_b^T + bW_b + x @ U_b^T + bU_b); scale/bias pre-folded,
        # single fused K=2*Dp dot.
        z = (
            jnp.dot(yx_bf, wut_ref[widx], preferred_element_type=jnp.float32)
            + bias_ref[bi]
        )
        # TODO(synk): on v6e/v7x (bf16 EUP) computing tanh in bf16 ~doubles EUP
        # throughput for small D_r; kept in f32 here for v5e safety/precision.
        h = jnp.tanh(z).astype(jnp.bfloat16)          # (TILE_N, Dp)

        # y <- y + h @ O_b^T   (f32 accumulate in the scratch)
        y_new = yx[:, :D] + jnp.dot(
            h, ot_ref[widx], preferred_element_type=jnp.float32)
        yx_ref[:, :D] = y_new

        @pl.when(bi == pl.num_programs(1) - 1)
        def _():
            y_ref[...] = y_new.astype(y_ref.dtype)

    return kernel


def _physical_vmem_bytes():
    try:
        kind = jax.devices()[0].device_kind.lower()
    except Exception:
        kind = ""
    if "v5" in kind or "v6" in kind:
        return 128 * _MIB
    # v7x has 64 MiB per TensorCore; default conservatively for unknown chips.
    return 64 * _MIB


def _derive_tiling(N, Dp, B, x_bytes, out_bytes, phys_vmem):
    """Pick (tile_n, N_pad, weights_resident, vmem_limit_bytes)."""
    w_block = (2 * Dp * Dp + Dp * Dp) * 2                  # bf16 WUt_b + Ot_b
    bias_bytes = 2 * B * Dp * 4                            # dbl-buffered f32 bias
    # Resident if the whole (double-buffered) weight set stays well under budget.
    resident = (2 * B * w_block + bias_bytes) <= int(0.35 * phys_vmem)
    w_bytes = 2 * B * w_block if resident else 2 * w_block

    budget = phys_vmem - 8 * _MIB                          # headroom for Mosaic
    per_row = Dp * (2 * x_bytes + 2 * out_bytes + 2 * 4)   # x, out (dbl-buf), scratch
    avail = budget - w_bytes - bias_bytes - 2 * _MIB
    tile_max = max(_SUBLANE, min(2048, (avail // per_row) // _SUBLANE * _SUBLANE))

    n8 = _round_up(N, _SUBLANE)
    if n8 <= tile_max:
        if n8 >= 2 * _SUBLANE:
            # >=2 N tiles so the "parallel" axis can use both v7x TensorCores.
            tile_n = _round_up(-(-n8 // 2), _SUBLANE)
        else:
            tile_n = n8
    else:
        tile_n = tile_max
    n_pad = _round_up(N, tile_n)

    est = (w_bytes + bias_bytes
           + 2 * tile_n * Dp * x_bytes + 2 * tile_n * Dp * out_bytes
           + tile_n * 2 * Dp * 4)
    vmem_limit = int(min(phys_vmem - 8 * _MIB, max(32 * _MIB, est + 16 * _MIB)))
    return tile_n, n_pad, resident, vmem_limit


def euler_snake(x, W, bW, U, bU, O):
    """x: (N, D). W, U, O: (B, D_r, D) torch-style (out, in). bW, bU: (B, D_r)."""
    N, D = x.shape
    B, D_r, D_in = W.shape
    assert D == D_in, "weight input dim must match x"
    assert D == D_r, "EulerSnake only well-defined for D == D_r"

    # Zero-pad feature dims to lane multiples (exact: padded columns stay 0).
    Dp = _round_up(D, _LANE)
    pad_d = Dp - D

    out_dtype = x.dtype
    x_bytes = jnp.dtype(x.dtype).itemsize
    out_bytes = jnp.dtype(out_dtype).itemsize
    phys_vmem = _physical_vmem_bytes()
    tile_n, n_pad, resident, vmem_limit = _derive_tiling(
        N, Dp, B, x_bytes, out_bytes, phys_vmem)

    # One-time XLA preprocessing: pad, transpose, fold the 0.5 scale into the
    # weights, fuse W/U along K, pre-sum biases, cast weights to bf16.
    Wp = jnp.pad(W, ((0, 0), (0, pad_d), (0, pad_d)))
    Up = jnp.pad(U, ((0, 0), (0, pad_d), (0, pad_d)))
    Op = jnp.pad(O, ((0, 0), (0, pad_d), (0, pad_d)))
    bWp = jnp.pad(bW, ((0, 0), (0, pad_d)))
    bUp = jnp.pad(bU, ((0, 0), (0, pad_d)))

    Wt = jnp.transpose(Wp, (0, 2, 1)) * 0.5                        # (B, Dp, Dp)
    Ut = jnp.transpose(Up, (0, 2, 1)) * 0.5                        # (B, Dp, Dp)
    WUt = jnp.concatenate([Wt, Ut], axis=1).astype(jnp.bfloat16)   # (B, 2Dp, Dp)
    Ot = jnp.transpose(Op, (0, 2, 1)).astype(jnp.bfloat16)         # (B, Dp, Dp)
    bias = (0.5 * (bWp + bUp)).astype(jnp.float32).reshape(B, 1, Dp)

    xp = jnp.pad(x, ((0, n_pad - N), (0, pad_d)))

    grid = (n_pad // tile_n, B)
    w_lead = B if resident else 1
    w_idx = (lambda n, b: (0, 0, 0)) if resident else (lambda n, b: (b, 0, 0))

    # TODO(synk): once confirmed MXU-bound, sweep pipeline_mode=pl.Buffered(3)
    # on the streamed weight specs and/or fp8 (v7x) / int8 (v6e) weights.
    y_pad = pl.pallas_call(
        _make_kernel(resident),
        out_shape=jax.ShapeDtypeStruct((n_pad, Dp), out_dtype),
        grid_spec=pltpu.PrefetchScalarGridSpec(
            num_scalar_prefetch=0,
            grid=grid,
            in_specs=[
                # x tile: changes only with the N-tile index, resident over B.
                pl.BlockSpec((tile_n, Dp), lambda n, b: (n, 0)),
                # Fused, pre-scaled inner weights (resident: whole B at once).
                pl.BlockSpec((w_lead, 2 * Dp, Dp), w_idx),
                # Pre-summed, pre-scaled biases: always fully resident.
                pl.BlockSpec((B, 1, Dp), lambda n, b: (0, 0, 0)),
                # Outer weights.
                pl.BlockSpec((w_lead, Dp, Dp), w_idx),
            ],
            out_specs=pl.BlockSpec((tile_n, Dp), lambda n, b: (n, 0)),
            scratch_shapes=[pltpu.VMEM((tile_n, 2 * Dp), jnp.float32)],
        ),
        compiler_params=pltpu.CompilerParams(
            dimension_semantics=("parallel", "arbitrary"),
            vmem_limit_bytes=vmem_limit,
        ),
    )(xp, WUt, bias, Ot)

    return y_pad[:N, :D]


def euler_snake_ref(x, W, bW, U, bU, O):
    y = x + 0.0
    B = W.shape[0]
    for i in range(B):
        inner = 0.5 * (y @ W[i].T + bW[i] + x @ U[i].T + bU[i])
        y = y + jnp.tanh(inner) @ O[i].T
    return y


if __name__ == "__main__":
    # Small shapes consistent with the module: D == D_r (required), B blocks.
    N, D, D_r, B = 8, 32, 32, 3

    key = jax.random.PRNGKey(0)
    k = jax.random.split(key, 6)
    bound = 1.0 / jnp.sqrt(D)  # PyTorch nn.Linear default init range
    x  = jax.random.normal(k[0], (N, D), dtype=jnp.float32)
    W  = jax.random.uniform(k[1], (B, D_r, D), jnp.float32, -bound, bound)
    bW = jax.random.uniform(k[2], (B, D_r),    jnp.float32, -bound, bound)
    U  = jax.random.uniform(k[3], (B, D_r, D), jnp.float32, -bound, bound)
    bU = jax.random.uniform(k[4], (B, D_r),    jnp.float32, -bound, bound)
    O  = jax.random.uniform(k[5], (B, D_r, D), jnp.float32, -bound, bound)

    y = euler_snake(x, W, bW, U, bU, O)
    y = jax.block_until_ready(y)

    y_ref = euler_snake_ref(x, W, bW, U, bU, O)
    # bf16 MXU dots (with f32 accumulation) -> deliberately loosened tolerance
    # vs the pure-f32 reference.
    assert jnp.allclose(y, y_ref, atol=5e-2, rtol=5e-2), "mismatch vs reference"

    print("KERNEL_OK")
</pallas_src>

<mosaic_0001>
module attributes {stable_mosaic.version = 11 : i64} {
  func.func @kernel(%arg0: i32, %arg1: i32, %arg2: memref<8x128xf32, #tpu.memory_space<vmem>>, %arg3: memref<3x256x128xbf16, #tpu.memory_space<vmem>>, %arg4: memref<3x1x128xf32, #tpu.memory_space<vmem>>, %arg5: memref<3x128x128xbf16, #tpu.memory_space<vmem>>, %arg6: memref<8x128xf32, #tpu.memory_space<vmem>>, %arg7: memref<8x256xf32, #tpu.memory_space<vmem>>) attributes {dimension_semantics = [#tpu.dimension_semantics<parallel>, #tpu.dimension_semantics<arbitrary>], iteration_bounds = array<i64: 1, 3>, scalar_prefetch = 0 : i64, scratch_operands = 1 : i64, tpu.core_type = #tpu.core_type<tc>, window_params = [{transform_indices = @transform_0, window_bounds = array<i64: 8, 128>}, {pipeline_mode = #tpu.pipeline_mode<synchronous>, transform_indices = @transform_1, window_bounds = array<i64: 3, 256, 128>}, {pipeline_mode = #tpu.pipeline_mode<synchronous>, transform_indices = @transform_2, window_bounds = array<i64: 3, 1, 128>}, {pipeline_mode = #tpu.pipeline_mode<synchronous>, transform_indices = @transform_3, window_bounds = array<i64: 3, 128, 128>}, {transform_indices = @transform_4, window_bounds = array<i64: 8, 128>}]} {
    %c0_i32 = arith.constant 0 : i32
    %0 = arith.cmpi eq, %arg1, %c0_i32 : i32
    %1 = arith.extui %0 : i1 to i32
    %c0_i32_0 = arith.constant 0 : i32
    %2 = arith.cmpi ne, %1, %c0_i32_0 : i32
    scf.if %2 {
      %c0_12 = arith.constant 0 : index
      %c0_13 = arith.constant 0 : index
      %26 = vector.load %arg2[%c0_12, %c0_13] : memref<8x128xf32, #tpu.memory_space<vmem>>, vector<8x128xf32>
      %c0_14 = arith.constant 0 : index
      %c0_15 = arith.constant 0 : index
      %27 = vector.load %arg7[%c0_14, %c0_15] : memref<8x256xf32, #tpu.memory_space<vmem>>, vector<8x128xf32>
      tpu.vector_store %arg7[%c0_14, %c0_15], %26 {strides = array<i32>} : memref<8x256xf32, #tpu.memory_space<vmem>>, vector<8x128xf32>,
      %c0_16 = arith.constant 0 : index
      %c128 = arith.constant 128 : index
      %28 = vector.load %arg7[%c0_16, %c128] : memref<8x256xf32, #tpu.memory_space<vmem>>, vector<8x128xf32>
      tpu.vector_store %arg7[%c0_16, %c128], %26 {strides = array<i32>} : memref<8x256xf32, #tpu.memory_space<vmem>>, vector<8x128xf32>,
    } else {
    }
    %c0 = arith.constant 0 : index
    %c0_1 = arith.constant 0 : index
    %3 = vector.load %arg7[%c0, %c0_1] : memref<8x256xf32, #tpu.memory_space<vmem>>, vector<8x256xf32>
    %4 = arith.truncf %3 : vector<8x256xf32> to vector<8x256xbf16>
    %5 = arith.index_cast %arg1 : i32 to index
    %c0_2 = arith.constant 0 : index
    %c0_3 = arith.constant 0 : index
    %6 = vector.load %arg3[%5, %c0_2, %c0_3] : memref<3x256x128xbf16, #tpu.memory_space<vmem>>, vector<1x256x128xbf16>
    %7 = vector.shape_cast %6 : vector<1x256x128xbf16> to vector<256x128xbf16>
    %cst = arith.constant dense<0.000000e+00> : vector<8x128xf32>
    %8 = tpu.matmul %4, %7, %cst {dimension_numbers = #tpu.dot_dimension_numbers<[1], [0], [0], [1], [0, 0, 1, 1], [], []>} : vector<8x256xbf16>, vector<256x128xbf16>, vector<8x128xf32> -> vector<8x128xf32>
    %9 = arith.index_cast %arg1 : i32 to index
    %c0_4 = arith.constant 0 : index
    %c0_5 = arith.constant 0 : index
    %10 = vector.load %arg4[%9, %c0_4, %c0_5] : memref<3x1x128xf32, #tpu.memory_space<vmem>>, vector<1x1x128xf32>
    %11 = vector.shape_cast %10 : vector<1x1x128xf32> to vector<1x128xf32>
    %12 = vector.broadcast %11 : vector<1x128xf32> to vector<8x128xf32>
    %13 = arith.addf %8, %12 : vector<8x128xf32>
    %14 = math.tanh %13 : vector<8x128xf32>
    %15 = arith.truncf %14 : vector<8x128xf32> to vector<8x128xbf16>
    %16 = vector.extract_strided_slice %3 {offsets = [0, 0], sizes = [8, 128], strides = [1, 1]} : vector<8x256xf32> to vector<8x128xf32>
    %17 = arith.index_cast %arg1 : i32 to index
    %c0_6 = arith.constant 0 : index
    %c0_7 = arith.constant 0 : index
    %18 = vector.load %arg5[%17, %c0_6, %c0_7] : memref<3x128x128xbf16, #tpu.memory_space<vmem>>, vector<1x128x128xbf16>
    %19 = vector.shape_cast %18 : vector<1x128x128xbf16> to vector<128x128xbf16>
    %cst_8 = arith.constant dense<0.000000e+00> : vector<8x128xf32>
    %20 = tpu.matmul %15, %19, %cst_8 {dimension_numbers = #tpu.dot_dimension_numbers<[1], [0], [0], [1], [0, 0, 1, 1], [], []>} : vector<8x128xbf16>, vector<128x128xbf16>, vector<8x128xf32> -> vector<8x128xf32>
    %21 = arith.addf %16, %20 : vector<8x128xf32>
    %c0_9 = arith.constant 0 : index
    %c0_10 = arith.constant 0 : index
    %22 = vector.load %arg7[%c0_9, %c0_10] : memref<8x256xf32, #tpu.memory_space<vmem>>, vector<8x128xf32>
    tpu.vector_store %arg7[%c0_9, %c0_10], %21 {strides = array<i32>} : memref<8x256xf32, #tpu.memory_space<vmem>>, vector<8x128xf32>,
    %c2_i32 = arith.constant 2 : i32
    %23 = arith.cmpi eq, %arg1, %c2_i32 : i32
    %24 = arith.extui %23 : i1 to i32
    %c0_i32_11 = arith.constant 0 : i32
    %25 = arith.cmpi ne, %24, %c0_i32_11 : i32
    scf.if %25 {
      %c0_12 = arith.constant 0 : index
      %c0_13 = arith.constant 0 : index
      %26 = vector.load %arg6[%c0_12, %c0_13] : memref<8x128xf32, #tpu.memory_space<vmem>>, vector<8x128xf32>
      tpu.vector_store %arg6[%c0_12, %c0_13], %21 {strides = array<i32>} : memref<8x128xf32, #tpu.memory_space<vmem>>, vector<8x128xf32>,
    } else {
    }
    return
  }
  func.func @transform_0(%arg0: i32, %arg1: i32) -> (i32, i32) {
    %c0_i32 = arith.constant 0 : i32
    %c0_i32_0 = arith.constant 0 : i32
    return %arg0, %c0_i32 : i32, i32
  }
  func.func @transform_1(%arg0: i32, %arg1: i32) -> (i32, i32, i32) {
    %c0_i32 = arith.constant 0 : i32
    %c0_i32_0 = arith.constant 0 : i32
    %c0_i32_1 = arith.constant 0 : i32
    %c0_i32_2 = arith.constant 0 : i32
    return %c0_i32, %c0_i32_0, %c0_i32_1 : i32, i32, i32
  }
  func.func @transform_2(%arg0: i32, %arg1: i32) -> (i32, i32, i32) {
    %c0_i32 = arith.constant 0 : i32
    %c0_i32_0 = arith.constant 0 : i32
    %c0_i32_1 = arith.constant 0 : i32
    %c0_i32_2 = arith.constant 0 : i32
    return %c0_i32, %c0_i32_0, %c0_i32_1 : i32, i32, i32
  }
  func.func @transform_3(%arg0: i32, %arg1: i32) -> (i32, i32, i32) {
    %c0_i32 = arith.constant 0 : i32
    %c0_i32_0 = arith.constant 0 : i32
    %c0_i32_1 = arith.constant 0 : i32
    %c0_i32_2 = arith.constant 0 : i32
    return %c0_i32, %c0_i32_0, %c0_i32_1 : i32, i32, i32
  }
  func.func @transform_4(%arg0: i32, %arg1: i32) -> (i32, i32) {
    %c0_i32 = arith.constant 0 : i32
    %c0_i32_0 = arith.constant 0 : i32
    return %arg0, %c0_i32 : i32, i32
  }
}

</mosaic_0001>

<bundles_post_ra>
// kernel: tpu_custom_call.1
= control target key start
LH: loop header
LB: loop body
LE: loop exit
PB: predicated region body
PF: predicated region fallthrough
CT: control target
= control target key end

     0   :  { %9 = vsyncpa [#allocation4], 0  ;;  %s1200_s0 = inlined_call_operand.hbm [shape: f32[8,128], index: 0, kind: input, shape index: {}]   ;;  %s1201_s1 = inlined_call_operand.hbm [shape: bf16[3,256,128], index: 1, kind: input, shape index: {}]   ;;  %s1202_s2 = inlined_call_operand.vmem [shape: f32[3,1,128], index: 2, kind: input, shape index: {}]   ;;  %s1203_s3 = inlined_call_operand.hbm [shape: bf16[3,128,128], index: 3, kind: input, shape index: {}]   ;;  %s1204_s4 = inlined_call_operand.hbm [shape: f32[8,128], index: 4, kind: output, shape index: {}]  }
   0x1   :  { %10 = vsyncpa [#allocation7], 0 }
   0x2   :  { %11 = vsyncpa [#allocation5], 0  ;;  %s990_s15 = smov 0   ;;  %s992_s16 = smov 0  }
   0x3   :  { %s994_s17 = smov 0  }
   0x4 LB: > { %s957_s18 = smov [#allocation6]   ;;  %s622_s20 = sadd.s32 4294967295, %s955_s17   ;;  %s955_s17 = sphi %s994_s17, %s17_s17   ;;  %s951_s16 = sphi %s992_s16, %s1217_s16   ;;  %s947_s15 = sphi %s990_s15, %s1216_s15  }
   0x5   : > { %s174_s19 = sshll.u32 %s957_s18, 4  ;;  %p623_p0 = scmp.ge.s32.totalorder %s955_s17, 1  ;;  %s1014_s19 = int_to_ptr.vmem [resolvable:$true] %s174_s19 }
   0x6   : > { %p149_p1 = scmp.lt.s32.totalorder %s955_s17, 4  ;;  %p1010_p2 = scmp.eq.s32.totalorder %s622_s20, 0 }
   0x7   : > { %s26_s24 = sadd.s32 1, %s951_s16  ;;  %s958_s26 = smov [#allocation3]  }
   0x8   : > { %s1208_s21 = scalar_select %p1010_p2, 1, 0 }
   0x9   : > { %p1016_p3 = pnand %p623_p0, %p149_p1  ;;  %p1029_p6 = scmp.ge.s32.totalorder %s26_s24, 3 }
   0xa   : > { %s164_s27 = sshll.u32 %s958_s26, 4  ;;  %s811_s30 = scalar_lea.hbm %s1201_s1, 6144  ;;  %s165_s27 = int_to_ptr.vmem [resolvable:$true] %s164_s27 }
   0xb   : > { %s1209_s22 = scalar_select %p1016_p3, 1, 0 }
   0xc   : > { %p735_p4 = pneg %p1016_p3  ;;  %p812_p7 = scmp.ne.s32.totalorder %s1201_s1, %s811_s30 }
   0xd   : > { %p818_p11 = scmp.lt.u32.totalorder %s811_s30, %s1201_s1 }
   0xe   : > { %p1024_p5 = pnand %p1010_p2, %p735_p4 }
  0x10   : > { %p1041_p8 = pneg %p1024_p5 }
  0x12   : > { %p814_p9 = pnand %p1041_p8, %p812_p7 }
  0x14   : > { %p815_p10 = pneg %p814_p9 }
  0x16   : > { %p820_p12 = pnand %p818_p11, %p815_p10 }
  0x18   : > { %823 = shalt.err (!%p820_p12)
}
  0x19   : > { %s824_s10 = scalar_lea.vmem %s1014_s19, 6144  ;;  %p832_p4 = scmp.lt.s32.totalorder %s1014_s19, %s1014_s19 }
  0x1a   : > { %p825_p13 = scmp.ne.s32.totalorder %s1014_s19, %s824_s10  ;;  %p833_p2 = scmp.lt.s32.totalorder %s824_s10, %s824_s10 }
  0x1c   : > { %p827_p0 = pnand %p825_p13, %p1041_p8  ;;  %p834_p7 = por %p833_p2, %p832_p4 }
  0x1e   : > { %p828_p1 = pneg %p827_p0 }
  0x20   : > { %p835_p9 = pnand %p834_p7, %p828_p1 }
  0x22   : > { %838 = shalt.err (!%p835_p9)
}
  0x23   : > { %s959_s11 = smov 64   ;;  %s960_s12 = smov 4  }
  0x24   : > { %741 = dma.hbm_to_vmem [thread:$0]  (!%p1024_p5), %s1201_s1, 6144, %s1014_s19, [#allocation7], %s959_s11, %s959_s11, %s960_s12  }
  0x25   : > { %s1219_s24 = smov (%p1029_p6, %s26_s24), 0  ;;  %s839_s28 = scalar_lea.hbm %s1200_s0, 128 }
  0x26   : > { %p840_p2 = scmp.ne.s32.totalorder %s1200_s0, %s839_s28  ;;  %p846_p12 = scmp.lt.u32.totalorder %s839_s28, %s1200_s0 }
  0x28   : > { %p842_p10 = pnand %p840_p2, %p1041_p8 }
  0x2a   : > { %p843_p11 = pneg %p842_p10 }
  0x2c   : > { %p848_p13 = pnand %p846_p12, %p843_p11 }
  0x2e   : > { %851 = shalt.err (!%p848_p13)
}
  0x2f   : > { %s852_s19 = scalar_lea.vmem %s165_s27, 128  ;;  %p860_p4 = scmp.lt.s32.totalorder %s165_s27, %s165_s27 }
  0x30   : > { %p853_p6 = scmp.ne.s32.totalorder %s165_s27, %s852_s19  ;;  %p861_p7 = scmp.lt.s32.totalorder %s852_s19, %s852_s19 }
  0x32   : > { %p855_p0 = pnand %p853_p6, %p1041_p8  ;;  %p862_p9 = por %p861_p7, %p860_p4 }
  0x34   : > { %p856_p1 = pneg %p855_p0 }
  0x36   : > { %p863_p3 = pnand %p862_p9, %p856_p1 }
  0x38   : > { %866 = shalt.err (!%p863_p3)
}
  0x39   : > { %738 = dma.hbm_to_vmem [thread:$0]  (!%p1024_p5), %s1200_s0, 128, %s165_s27, [#allocation4]  }
  0x3a   : > { %s961_s9 = smov [#allocation8]   ;;  %s867_s18 = scalar_lea.hbm %s1203_s3, 3072 }
  0x3b   : > { %s190_s10 = sshll.u32 %s961_s9, 4  ;;  %p868_p2 = scmp.ne.s32.totalorder %s1203_s3, %s867_s18  ;;  %s191_s10 = int_to_ptr.vmem [resolvable:$true] %s190_s10 }
  0x3c   : > { %p874_p11 = scmp.lt.u32.totalorder %s867_s18, %s1203_s3 }
  0x3d   : > { %p870_p3 = pnand %p868_p2, %p1041_p8 }
  0x3f   : > { %p871_p10 = pneg %p870_p3 }
  0x41   : > { %p876_p12 = pnand %p874_p11, %p871_p10 }
  0x43   : > { %879 = shalt.err (!%p876_p12)
}
  0x44   : > { %s880_s27 = scalar_lea.vmem %s191_s10, 3072  ;;  %p888_p1 = scmp.lt.s32.totalorder %s191_s10, %s191_s10 }
  0x45   : > { %p881_p13 = scmp.ne.s32.totalorder %s191_s10, %s880_s27  ;;  %p889_p4 = scmp.lt.s32.totalorder %s880_s27, %s880_s27 }
  0x47   : > { %p883_p6 = pnand %p881_p13, %p1041_p8  ;;  %p890_p7 = por %p889_p4, %p888_p1 }
  0x49   : > { %p884_p0 = pneg %p883_p6 }
  0x4b   : > { %p891_p9 = pnand %p890_p7, %p884_p0 }
  0x4d   : > { %894 = shalt.err (!%p891_p9)
}
  0x4e   : > { %744 = dma.hbm_to_vmem [thread:$0]  (!%p1024_p5), %s1203_s3, 3072, %s191_s10, [#allocation7], %s959_s11, %s959_s11, %s960_s12  }
  0x4f   : > { %p1213_p2 = scmp.ne.s32.totalorder %s1209_s22, 0 }
  0x50   : > { %p1214_p8 = scmp.ne.s32.totalorder (!%p1213_p2), %s1208_s21, 0 }
  0x51   : > { %206 = sbr.rel (%p1213_p2) target bundleno = 605 (0x25d), region = 36 }
  0x58   : > { %934 = dma.done.wait (%p1214_p8), [#allocation4], 128  }
  0x59   : > { %936 = vsyncadd (%p1214_p8), [#allocation4], 4294967168 }
  0x5a   : > { %938 = dma.done.wait (%p1214_p8), [#allocation7], 9216  }
  0x5b   : > { %940 = vsyncadd (%p1214_p8), [#allocation7], 4294958080  ;;  %p631_p3 = scmp.ne.s32.totalorder %s947_s15, 0 }
  0x5c   : > { %v235_v0 = vld [vmem:[#allocation3] sm:$0xff] (!%p631_p3) }
  0x5d   : > { %234 = sbr.rel (%p631_p3) target bundleno = 100 (0x64), region = 52  ;;  %236 = vst [vmem:[#allocation2] sm:$0xff] (!%p631_p3), %v235_v0  ;;  %237 = vst [vmem:[#allocation2 + $0x8] sm:$0xff] (!%p631_p3), %v235_v0 }
  0x64 PF: > { %s666_s22 = sshll.u32 %s947_s15, 7  ;;  %v239_v1 = vld [vmem:[#allocation2 + $0x8] sm:$0xff]  ;;  %v962_v3 = vmov 0.0   ;;  %s667_s21 = sshll.u32 %s947_s15, 6  ;;  %v238_v23 = vld [vmem:[#allocation2] sm:$0xff]  ;;  %vm963_vm0 = vmmov 0  }
  0x65   : > { %v241_v2 = vpack.c.bf16 %v239_v1, %v239_v1  ;;  %699 = vmatprep.subr.bf16.mxu1 %v962_v3  ;;  %s1121_s23 = scalar_lea.vmem [#allocation6], %s666_s22  ;;  %s1135_s7 = scalar_lea.vmem [#allocation8], %s667_s21  ;;  %v240_v24 = vpack.c.bf16 %v238_v23, %v238_v23  ;;  %715 = vmatprep.mubr.msk.bf16.mxu1 %vm963_vm0, %v962_v3 }
  0x66   : > { %v785_v4 = vld [vmem:[%s1121_s23 + $0x40] sm:$0xff]   ;;  %v787_v6 = vld [vmem:[%s1121_s23 + $0x48] sm:$0xff]   ;;  %v789_v8 = vld [vmem:[%s1121_s23 + $0x50] sm:$0xff]   ;;  %s277_s19 = scalar_lea.vmem %s1202_s2, %s947_s15  ;;  %p661_p5 = scmp.ne.s32.totalorder %s947_s15, 2 }
  0x67   : > { %v786_v5 = vld [vmem:[%s1121_s23] sm:$0xff]   ;;  %413 = vmatprep.mubr.bf16.mxu0 %v241_v2  ;;  %668 = vmatprep.subr.bf16.mxu0 %v785_v4  ;;  %v788_v7 = vld [vmem:[%s1121_s23 + $0x8] sm:$0xff]   ;;  %v790_v9 = vld [vmem:[%s1121_s23 + $0x10] sm:$0xff]  }
  0x68   : > { %669 = vmatpush3.bf16.msra.mxu0 %v786_v5  ;;  %v791_v10 = vld [vmem:[%s1121_s23 + $0x58] sm:$0xff]   ;;  %v793_v12 = vld [vmem:[%s1121_s23 + $0x60] sm:$0xff]   ;;  %v795_v14 = vld [vmem:[%s1121_s23 + $0x68] sm:$0xff]  }
  0x69   : > { %670 = vmatprep.subr.bf16.mxu0 %v787_v6  ;;  %v792_v11 = vld [vmem:[%s1121_s23 + $0x18] sm:$0xff]   ;;  %v794_v13 = vld [vmem:[%s1121_s23 + $0x20] sm:$0xff]   ;;  %v796_v16 = vld [vmem:[%s1121_s23 + $0x28] sm:$0xff]  }
  0x6a   : > { %v801_v15 = vld [vmem:[%s1135_s7] sm:$0xff]   ;;  %v797_v17 = vld [vmem:[%s1121_s23 + $0x70] sm:$0xff]   ;;  %v802_v18 = vld [vmem:[%s1135_s7 + $0x8] sm:$0xff]  }
  0x6b   : > { %700 = vmatpush3.bf16.msra.mxu1 %v801_v15  ;;  %v803_v19 = vld [vmem:[%s1135_s7 + $0x10] sm:$0xff]   ;;  %v799_v21 = vld [vmem:[%s1121_s23 + $0x78] sm:$0xff]   ;;  %v805_v26 = vld [vmem:[%s1135_s7 + $0x20] sm:$0xff]  }
  0x6c   : > { %671 = vmatpush3.bf16.msra.mxu0 %v788_v7  ;;  %701 = vmatprep.subr.bf16.mxu1 %v962_v3  ;;  %v798_v20 = vld [vmem:[%s1121_s23 + $0x30] sm:$0xff]   ;;  %v800_v22 = vld [vmem:[%s1121_s23 + $0x38] sm:$0xff]   ;;  %v806_v27 = vld [vmem:[%s1135_s7 + $0x28] sm:$0xff]  }
  0x6d   : > { %672 = vmatprep.subr.bf16.mxu0 %v789_v8  ;;  %v804_v25 = vld [vmem:[%s1135_s7 + $0x18] sm:$0xff]   ;;  %v807_v28 = vld [vmem:[%s1135_s7 + $0x30] sm:$0xff]   ;;  %v634_v31 = vld [vmem:[%s277_s19] ss:$0 sm:$0xff] }
  0x6e   : > { %v808_v29 = vld [vmem:[%s1135_s7 + $0x38] sm:$0xff]  }
  0x6f   : > { %702 = vmatpush3.bf16.msra.mxu1 %v802_v18 }
  0x70   : > { %673 = vmatpush3.bf16.msra.mxu0 %v790_v9  ;;  %703 = vmatprep.subr.bf16.mxu1 %v962_v3 }
  0x71   : > { %674 = vmatprep.subr.bf16.mxu0 %v791_v10 }
  0x73   : > { %704 = vmatpush3.bf16.msra.mxu1 %v803_v19 }
  0x74   : > { %675 = vmatpush3.bf16.msra.mxu0 %v792_v11  ;;  %705 = vmatprep.subr.bf16.mxu1 %v962_v3 }
  0x75   : > { %676 = vmatprep.subr.bf16.mxu0 %v793_v12 }
  0x77   : > { %706 = vmatpush3.bf16.msra.mxu1 %v804_v25 }
  0x78   : > { %677 = vmatpush3.bf16.msra.mxu0 %v794_v13  ;;  %707 = vmatprep.subr.bf16.mxu1 %v962_v3 }
  0x79   : > { %678 = vmatprep.subr.bf16.mxu0 %v795_v14 }
  0x7b   : > { %708 = vmatpush3.bf16.msra.mxu1 %v805_v26 }
  0x7c   : > { %679 = vmatpush3.bf16.msra.mxu0 %v796_v16  ;;  %709 = vmatprep.subr.bf16.mxu1 %v962_v3 }
  0x7d   : > { %680 = vmatprep.subr.bf16.mxu0 %v797_v17 }
  0x7f   : > { %710 = vmatpush3.bf16.msra.mxu1 %v806_v27 }
  0x80   : > { %681 = vmatpush3.bf16.msra.mxu0 %v798_v20  ;;  %711 = vmatprep.subr.bf16.mxu1 %v962_v3 }
  0x81   : > { %682 = vmatprep.subr.bf16.mxu0 %v799_v21 }
  0x83   : > { %712 = vmatpush3.bf16.msra.mxu1 %v807_v28 }
  0x84   : > { %683 = vmatpush3.bf16.msra.mxu0 %v800_v22  ;;  %713 = vmatprep.subr.bf16.mxu1 %v962_v3 }
  0x87   : > { %414 = vmatmul.mubr.bf16.vlgmr.msra.gmra.mrb[0].mxu0 %v240_v24  ;;  %714 = vmatpush3.bf16.msra.mxu1 %v808_v29 }
 0x15a   : > { %v684_v30 = vpop.f32.mrb[0].mxu0 }
 0x15b   : > { %v685_v32 = vpop.f32.mrb[1].mxu0 }
 0x15c   : > { %v686_v33 = vadd.f32 %v685_v32, %v684_v30  ;;  %v687_v34 = vpop.f32.mrb[2].mxu0 }
 0x15d   : > { %v688_v35 = vpop.f32.mrb[3].mxu0 }
 0x15e   : > { %v416_v36 = vadd.f32 %v686_v33, %v634_v31 }
 0x160   : > { %809 = vtanh.f32 %v416_v36 }
 0x16a   : > { %v810_v37 = vpop.eup %809 }
 0x16b   : > { %v422_v38 = vpack.c.bf16 %v810_v37, %v810_v37 }
 0x16d   : > { %716 = vmatmul.mubr.bf16.vlgmr.msra.gmra.mrb[0].mxu1 %v422_v38 }
 0x23d   : > { %535 = sbr.rel (%p661_p5) target bundleno = 580 (0x244), region = 56 }
 0x240   : > { %v524_v39 = vpop.f32.mrb[0].mxu1 }
 0x241   : > { %v530_v40 = vadd.f32 %v524_v39, %v238_v23  ;;  %v717_v41 = vpop.f32.mrb[1].mxu1 }
 0x242   : > { %v527_v42 = vpop.f32.mrb[2].mxu1 }
 0x243   : > { %531 = vst [vmem:[#allocation2] sm:$0xff] %v530_v40  ;;  %v718_v43 = vpop.f32.mrb[3].mxu1  ;;  %536 = vst [vmem:[#allocation9] sm:$0xff] (!%p661_p5), %v530_v40 }
 0x244 PF: > { %p1165_p10 = scmp.eq.s32.totalorder %s622_s20, 2  ;;  %s964_s8 = smov [#allocation9]  }
 0x245   : > { %s546_s9 = sshll.u32 %s964_s8, 4  ;;  %s547_s9 = int_to_ptr.vmem [resolvable:$true] %s546_s9 }
 0x246   : > { %s895_s10 = scalar_lea.vmem %s547_s9, 128  ;;  %p902_p6 = scmp.lt.s32.totalorder %s547_s9, %s547_s9 }
 0x247   : > { %p896_p11 = scmp.ne.s32.totalorder %s547_s9, %s895_s10  ;;  %p903_p0 = scmp.lt.s32.totalorder %s895_s10, %s895_s10 }
 0x249   : > { %p897_p12 = pnand %p896_p11, %p1165_p10  ;;  %p904_p1 = por %p903_p0, %p902_p6 }
 0x24b   : > { %p898_p13 = pneg %p897_p12 }
 0x24d   : > { %p905_p4 = pnand %p904_p1, %p898_p13 }
 0x24f   : > { %908 = shalt.err (!%p905_p4)
}
 0x250   : > { %s909_s20 = scalar_lea.hbm %s1204_s4, 128 }
 0x251   : > { %p910_p7 = scmp.ne.s32.totalorder %s1204_s4, %s909_s20  ;;  %p915_p8 = scmp.lt.u32.totalorder %s909_s20, %s1204_s4 }
 0x253   : > { %p911_p9 = pnand %p910_p7, %p1165_p10 }
 0x255   : > { %p912_p2 = pneg %p911_p9 }
 0x257   : > { %p917_p3 = pnand %p915_p8, %p912_p2 }
 0x259   : > { %920 = shalt.err (!%p917_p3)
}
 0x25a   : > { %732 = dma.vmem_to_hbm [thread:$0]  (%p1165_p10), %s547_s9, 128, %s1204_s4, [#allocation5]  }
 0x25b   : > { %942 = dma.done.wait (%p1165_p10), [#allocation5], 128  }
 0x25c   : > { %944 = vsyncadd (%p1165_p10), [#allocation5], 4294967168 }
 0x25d PF: > { %s17_s17 = sadd.s32 1, %s955_s17   ;;  %s1216_s15 = smov %s951_s16 }
 0x25e   : > { %p14_p5 = scmp.ge.s32.totalorder %s17_s17, 5   ;;  %s1217_s16 = smov %s1219_s24 }
 0x260   :  { %16 = sbr.rel (!%p14_p5) target bundleno = 4 (0x4), region = 86 }
 0x267   :  { %559 = vsyncpa [#allocation4], 1 }
 0x268   :  { %561 = vsyncpa [#allocation4 + $0x1], 1 }
 0x269   :  { %562 = vsyncpa [#allocation7], 1 }
 0x26a   :  { %563 = vsyncpa [#allocation5], 1 }
 0x26b   :  { %565 = vsyncpa [#allocation5 + $0x1], 1 }

</bundles_post_ra>
